<compile_context>
chip_gen: v6e
topology: v6e:2x2x1
jax: 0.10.0
libtpu: 0.0.40
codegen_flags: <defaults>
</compile_context>

<pallas_src>
import jax
import jax.numpy as jnp
from jax.experimental import pallas as pl
from jax.experimental.pallas import tpu as pltpu

NEG_SLOPE = 0.01  # nn.LeakyReLU() default


def _leaky_relu(x):
    # mul + max (2 VALU ops) instead of cmp + select + mul.
    return jnp.maximum(x, NEG_SLOPE * x)


def _round_up(n, m):
    return (n + m - 1) // m * m


def _pick_tile(batch, tile_b_max):
    """Largest multiple-of-128 tile <= tile_b_max that keeps zero-padding small."""
    tile_b_max = max(128, (tile_b_max // 128) * 128)
    b128 = _round_up(max(batch, 1), 128)
    tile_b = min(tile_b_max, b128)
    # Shrink while padded garbage rows exceed ~1/8 of the real batch.
    while tile_b > 128 and (_round_up(batch, tile_b) - batch) > max(batch // 8, 128):
        tile_b //= 2
    return tile_b


def encoder1_kernel(x_ref, w1_ref, w2_ref, w3_ref, w4_ref, w5_ref, b_ref, o_ref):
    # Packed biases: row r of b_ref holds layer r's bias in lanes [0:out_r).
    b1 = b_ref[0:1, 0:64]
    b2 = b_ref[1:2, 0:32]
    b3 = b_ref[2:3, 0:16]
    b4 = b_ref[3:4, 0:8]
    b5 = b_ref[4:5, 0:4]

    # (TILE_B, 128) bf16 tile, streamed & double-buffered by the BlockSpec.
    h = x_ref[...]

    # Every layer: batch streams through the MXU, small W_t is stationary,
    # accumulation in f32, activation in f32, re-pack to bf16 for the next dot.
    h = jnp.dot(h, w1_ref[...], preferred_element_type=jnp.float32) + b1
    h = _leaky_relu(h).astype(jnp.bfloat16)
    h = jnp.dot(h, w2_ref[...], preferred_element_type=jnp.float32) + b2
    h = _leaky_relu(h).astype(jnp.bfloat16)
    h = jnp.dot(h, w3_ref[...], preferred_element_type=jnp.float32) + b3
    h = _leaky_relu(h).astype(jnp.bfloat16)
    h = jnp.dot(h, w4_ref[...], preferred_element_type=jnp.float32) + b4
    h = _leaky_relu(h).astype(jnp.bfloat16)
    h = jnp.dot(h, w5_ref[...], preferred_element_type=jnp.float32) + b5

    o_ref[...] = h.astype(o_ref.dtype)  # (TILE_B, 4)


def encoder1_forward(x, params, tile_b_max=8192):
    """x: (B, 128) float. params: 5 tuples (W, b), PyTorch layout W:(out,in), b:(out,)."""
    B, F = x.shape
    assert F == 128, F

    tile_b = _pick_tile(B, tile_b_max)
    b_pad = _round_up(B, tile_b)

    # bf16 hot path for the streamed activations and the resident weights.
    x = x.astype(jnp.bfloat16)
    if b_pad != B:
        x = jnp.pad(x, ((0, b_pad - B), (0, 0)))

    # Pre-transpose weights to (in, out) so the MXU keeps them stationary.
    ws_t = [jnp.asarray(w, jnp.float32).T.astype(jnp.bfloat16) for (w, _) in params]

    # Pack the 5 tiny biases into one (8, 128) f32 buffer (single resident DMA),
    # one sublane row per layer, each starting at lane 0.
    b_packed = jnp.zeros((8, 128), jnp.float32)
    for row, (_, b) in enumerate(params):
        b_packed = b_packed.at[row, : b.shape[0]].set(b.astype(jnp.float32))

    grid = (b_pad // tile_b,)
    w_specs = [pl.BlockSpec(w.shape, lambda i: (0, 0)) for w in ws_t]  # VMEM-resident

    out = pl.pallas_call(
        encoder1_kernel,
        out_shape=jax.ShapeDtypeStruct((b_pad, 4), jnp.float32),
        grid=grid,
        in_specs=[pl.BlockSpec((tile_b, 128), lambda i: (i, 0))]   # pipelined x tiles
                 + w_specs                                         # resident weights
                 + [pl.BlockSpec((8, 128), lambda i: (0, 0))],     # packed biases
        out_specs=pl.BlockSpec((tile_b, 4), lambda i: (i, 0)),
        compiler_params=pltpu.CompilerParams(
            dimension_semantics=("parallel",),
            vmem_limit_bytes=32 * 1024 * 1024,
        ),
    )(x, *ws_t, b_packed)

    return out[:B]                                                 # (B, 4), no transpose


def init_params(key):
    """Deterministic init matching nn.Linear (PyTorch layout: W (out,in), b (out,))."""
    dims = [128, 64, 32, 16, 8, 4]
    params = []
    for i in range(5):
        fan_in, fan_out = dims[i], dims[i + 1]
        key, kw, kb = jax.random.split(key, 3)
        bound = 1.0 / (fan_in ** 0.5)
        w = jax.random.uniform(kw, (fan_out, fan_in), jnp.float32, -bound, bound)
        b = jax.random.uniform(kb, (fan_out,), jnp.float32, -bound, bound)
        params.append((w, b))
    return params


def reference_forward(x, params):
    h = x
    for i, (w, b) in enumerate(params):
        h = h @ w.T + b
        if i < 4:
            h = jnp.where(h > 0, h, NEG_SLOPE * h)
    return h


if __name__ == "__main__":
    key = jax.random.PRNGKey(0)
    kx, kp = jax.random.split(key)
    params = init_params(kp)

    # bf16 hot path -> loosened tolerances vs the f32 reference.
    ATOL = RTOL = 5e-2

    # Small demo batch (single 128-row tile after padding).
    B = 8
    x = jax.random.normal(kx, (B, 128), jnp.float32)
    out = jax.block_until_ready(encoder1_forward(x, params))
    ref = reference_forward(x, params)
    assert out.shape == (B, 4), out.shape
    assert jnp.allclose(out, ref, atol=ATOL, rtol=RTOL), "mismatch vs reference (B=8)"

    # Multi-tile ragged batch: 3 grid steps of TILE_B=128, last tile partial.
    B2 = 300
    x2 = jax.random.normal(kx, (B2, 128), jnp.float32)
    out2 = jax.block_until_ready(encoder1_forward(x2, params, tile_b_max=128))
    ref2 = reference_forward(x2, params)
    assert out2.shape == (B2, 4), out2.shape
    assert jnp.allclose(out2, ref2, atol=ATOL, rtol=RTOL), "mismatch vs reference (B=300)"

    # Larger batch exercising a bigger tile (tile_b=1024) + padding guard.
    B3 = 1000
    x3 = jax.random.normal(kx, (B3, 128), jnp.float32)
    out3 = jax.block_until_ready(encoder1_forward(x3, params))
    ref3 = reference_forward(x3, params)
    assert out3.shape == (B3, 4), out3.shape
    assert jnp.allclose(out3, ref3, atol=ATOL, rtol=RTOL), "mismatch vs reference (B=1000)"

    print("KERNEL_OK")
</pallas_src>

<mosaic_0001>
module attributes {stable_mosaic.version = 11 : i64} {
  func.func @encoder1_kernel(%arg0: i32, %arg1: memref<128x128xbf16, #tpu.memory_space<vmem>>, %arg2: memref<128x64xbf16, #tpu.memory_space<vmem>>, %arg3: memref<64x32xbf16, #tpu.memory_space<vmem>>, %arg4: memref<32x16xbf16, #tpu.memory_space<vmem>>, %arg5: memref<16x8xbf16, #tpu.memory_space<vmem>>, %arg6: memref<8x4xbf16, #tpu.memory_space<vmem>>, %arg7: memref<8x128xf32, #tpu.memory_space<vmem>>, %arg8: memref<128x4xf32, #tpu.memory_space<vmem>>) attributes {dimension_semantics = [#tpu.dimension_semantics<parallel>], iteration_bounds = array<i64: 1>, scalar_prefetch = 0 : i64, scratch_operands = 0 : i64, tpu.core_type = #tpu.core_type<tc>, window_params = [{transform_indices = @transform_0, window_bounds = array<i64: 128, 128>}, {pipeline_mode = #tpu.pipeline_mode<synchronous>, transform_indices = @transform_1, window_bounds = array<i64: 128, 64>}, {pipeline_mode = #tpu.pipeline_mode<synchronous>, transform_indices = @transform_2, window_bounds = array<i64: 64, 32>}, {pipeline_mode = #tpu.pipeline_mode<synchronous>, transform_indices = @transform_3, window_bounds = array<i64: 32, 16>}, {pipeline_mode = #tpu.pipeline_mode<synchronous>, transform_indices = @transform_4, window_bounds = array<i64: 16, 8>}, {pipeline_mode = #tpu.pipeline_mode<synchronous>, transform_indices = @transform_5, window_bounds = array<i64: 8, 4>}, {pipeline_mode = #tpu.pipeline_mode<synchronous>, transform_indices = @transform_6, window_bounds = array<i64: 8, 128>}, {transform_indices = @transform_7, window_bounds = array<i64: 128, 4>}]} {
    %c0 = arith.constant 0 : index
    %c0_0 = arith.constant 0 : index
    %0 = vector.load %arg7[%c0, %c0_0] : memref<8x128xf32, #tpu.memory_space<vmem>>, vector<1x64xf32>
    %c1 = arith.constant 1 : index
    %c0_1 = arith.constant 0 : index
    %1 = vector.load %arg7[%c1, %c0_1] : memref<8x128xf32, #tpu.memory_space<vmem>>, vector<1x32xf32>
    %c2 = arith.constant 2 : index
    %c0_2 = arith.constant 0 : index
    %2 = vector.load %arg7[%c2, %c0_2] : memref<8x128xf32, #tpu.memory_space<vmem>>, vector<1x16xf32>
    %c3 = arith.constant 3 : index
    %c0_3 = arith.constant 0 : index
    %3 = vector.load %arg7[%c3, %c0_3] : memref<8x128xf32, #tpu.memory_space<vmem>>, vector<1x8xf32>
    %c4 = arith.constant 4 : index
    %c0_4 = arith.constant 0 : index
    %4 = vector.load %arg7[%c4, %c0_4] : memref<8x128xf32, #tpu.memory_space<vmem>>, vector<1x4xf32>
    %c0_5 = arith.constant 0 : index
    %c0_6 = arith.constant 0 : index
    %5 = vector.load %arg1[%c0_5, %c0_6] : memref<128x128xbf16, #tpu.memory_space<vmem>>, vector<128x128xbf16>
    %c0_7 = arith.constant 0 : index
    %c0_8 = arith.constant 0 : index
    %6 = vector.load %arg2[%c0_7, %c0_8] : memref<128x64xbf16, #tpu.memory_space<vmem>>, vector<128x64xbf16>
    %cst = arith.constant dense<0.000000e+00> : vector<128x64xf32>
    %7 = tpu.matmul %5, %6, %cst {dimension_numbers = #tpu.dot_dimension_numbers<[1], [0], [0], [1], [0, 0, 1, 1], [], []>} : vector<128x128xbf16>, vector<128x64xbf16>, vector<128x64xf32> -> vector<128x64xf32>
    %8 = vector.broadcast %0 : vector<1x64xf32> to vector<128x64xf32>
    %9 = arith.addf %7, %8 : vector<128x64xf32>
    %cst_9 = arith.constant 0.00999999977 : f32
    %10 = vector.broadcast %cst_9 : f32 to vector<128x64xf32>
    %11 = arith.mulf %10, %9 : vector<128x64xf32>
    %12 = arith.maximumf %9, %11 : vector<128x64xf32>
    %13 = arith.truncf %12 : vector<128x64xf32> to vector<128x64xbf16>
    %c0_10 = arith.constant 0 : index
    %c0_11 = arith.constant 0 : index
    %14 = vector.load %arg3[%c0_10, %c0_11] : memref<64x32xbf16, #tpu.memory_space<vmem>>, vector<64x32xbf16>
    %cst_12 = arith.constant dense<0.000000e+00> : vector<128x32xf32>
    %15 = tpu.matmul %13, %14, %cst_12 {dimension_numbers = #tpu.dot_dimension_numbers<[1], [0], [0], [1], [0, 0, 1, 1], [], []>} : vector<128x64xbf16>, vector<64x32xbf16>, vector<128x32xf32> -> vector<128x32xf32>
    %16 = vector.broadcast %1 : vector<1x32xf32> to vector<128x32xf32>
    %17 = arith.addf %15, %16 : vector<128x32xf32>
    %cst_13 = arith.constant 0.00999999977 : f32
    %18 = vector.broadcast %cst_13 : f32 to vector<128x32xf32>
    %19 = arith.mulf %18, %17 : vector<128x32xf32>
    %20 = arith.maximumf %17, %19 : vector<128x32xf32>
    %21 = arith.truncf %20 : vector<128x32xf32> to vector<128x32xbf16>
    %c0_14 = arith.constant 0 : index
    %c0_15 = arith.constant 0 : index
    %22 = vector.load %arg4[%c0_14, %c0_15] : memref<32x16xbf16, #tpu.memory_space<vmem>>, vector<32x16xbf16>
    %cst_16 = arith.constant dense<0.000000e+00> : vector<128x16xf32>
    %23 = tpu.matmul %21, %22, %cst_16 {dimension_numbers = #tpu.dot_dimension_numbers<[1], [0], [0], [1], [0, 0, 1, 1], [], []>} : vector<128x32xbf16>, vector<32x16xbf16>, vector<128x16xf32> -> vector<128x16xf32>
    %24 = vector.broadcast %2 : vector<1x16xf32> to vector<128x16xf32>
    %25 = arith.addf %23, %24 : vector<128x16xf32>
    %cst_17 = arith.constant 0.00999999977 : f32
    %26 = vector.broadcast %cst_17 : f32 to vector<128x16xf32>
    %27 = arith.mulf %26, %25 : vector<128x16xf32>
    %28 = arith.maximumf %25, %27 : vector<128x16xf32>
    %29 = arith.truncf %28 : vector<128x16xf32> to vector<128x16xbf16>
    %c0_18 = arith.constant 0 : index
    %c0_19 = arith.constant 0 : index
    %30 = vector.load %arg5[%c0_18, %c0_19] : memref<16x8xbf16, #tpu.memory_space<vmem>>, vector<16x8xbf16>
    %cst_20 = arith.constant dense<0.000000e+00> : vector<128x8xf32>
    %31 = tpu.matmul %29, %30, %cst_20 {dimension_numbers = #tpu.dot_dimension_numbers<[1], [0], [0], [1], [0, 0, 1, 1], [], []>} : vector<128x16xbf16>, vector<16x8xbf16>, vector<128x8xf32> -> vector<128x8xf32>
    %32 = vector.broadcast %3 : vector<1x8xf32> to vector<128x8xf32>
    %33 = arith.addf %31, %32 : vector<128x8xf32>
    %cst_21 = arith.constant 0.00999999977 : f32
    %34 = vector.broadcast %cst_21 : f32 to vector<128x8xf32>
    %35 = arith.mulf %34, %33 : vector<128x8xf32>
    %36 = arith.maximumf %33, %35 : vector<128x8xf32>
    %37 = arith.truncf %36 : vector<128x8xf32> to vector<128x8xbf16>
    %c0_22 = arith.constant 0 : index
    %c0_23 = arith.constant 0 : index
    %38 = vector.load %arg6[%c0_22, %c0_23] : memref<8x4xbf16, #tpu.memory_space<vmem>>, vector<8x4xbf16>
    %cst_24 = arith.constant dense<0.000000e+00> : vector<128x4xf32>
    %39 = tpu.matmul %37, %38, %cst_24 {dimension_numbers = #tpu.dot_dimension_numbers<[1], [0], [0], [1], [0, 0, 1, 1], [], []>} : vector<128x8xbf16>, vector<8x4xbf16>, vector<128x4xf32> -> vector<128x4xf32>
    %40 = vector.broadcast %4 : vector<1x4xf32> to vector<128x4xf32>
    %41 = arith.addf %39, %40 : vector<128x4xf32>
    %c0_25 = arith.constant 0 : index
    %c0_26 = arith.constant 0 : index
    %42 = vector.load %arg8[%c0_25, %c0_26] : memref<128x4xf32, #tpu.memory_space<vmem>>, vector<128x4xf32>
    tpu.vector_store %arg8[%c0_25, %c0_26], %41 {strides = array<i32>} : memref<128x4xf32, #tpu.memory_space<vmem>>, vector<128x4xf32>,
    return
  }
  func.func @transform_0(%arg0: i32) -> (i32, i32) {
    %c0_i32 = arith.constant 0 : i32
    %c0_i32_0 = arith.constant 0 : i32
    return %arg0, %c0_i32 : i32, i32
  }
  func.func @transform_1(%arg0: i32) -> (i32, i32) {
    %c0_i32 = arith.constant 0 : i32
    %c0_i32_0 = arith.constant 0 : i32
    %c0_i32_1 = arith.constant 0 : i32
    return %c0_i32, %c0_i32_0 : i32, i32
  }
  func.func @transform_2(%arg0: i32) -> (i32, i32) {
    %c0_i32 = arith.constant 0 : i32
    %c0_i32_0 = arith.constant 0 : i32
    %c0_i32_1 = arith.constant 0 : i32
    return %c0_i32, %c0_i32_0 : i32, i32
  }
  func.func @transform_3(%arg0: i32) -> (i32, i32) {
    %c0_i32 = arith.constant 0 : i32
    %c0_i32_0 = arith.constant 0 : i32
    %c0_i32_1 = arith.constant 0 : i32
    return %c0_i32, %c0_i32_0 : i32, i32
  }
  func.func @transform_4(%arg0: i32) -> (i32, i32) {
    %c0_i32 = arith.constant 0 : i32
    %c0_i32_0 = arith.constant 0 : i32
    %c0_i32_1 = arith.constant 0 : i32
    return %c0_i32, %c0_i32_0 : i32, i32
  }
  func.func @transform_5(%arg0: i32) -> (i32, i32) {
    %c0_i32 = arith.constant 0 : i32
    %c0_i32_0 = arith.constant 0 : i32
    %c0_i32_1 = arith.constant 0 : i32
    return %c0_i32, %c0_i32_0 : i32, i32
  }
  func.func @transform_6(%arg0: i32) -> (i32, i32) {
    %c0_i32 = arith.constant 0 : i32
    %c0_i32_0 = arith.constant 0 : i32
    %c0_i32_1 = arith.constant 0 : i32
    return %c0_i32, %c0_i32_0 : i32, i32
  }
  func.func @transform_7(%arg0: i32) -> (i32, i32) {
    %c0_i32 = arith.constant 0 : i32
    %c0_i32_0 = arith.constant 0 : i32
    return %arg0, %c0_i32 : i32, i32
  }
}

</mosaic_0001>

<bundles_post_ra>
// kernel: tpu_custom_call.1
= control target key start
LH: loop header
LB: loop body
LE: loop exit
PB: predicated region body
PF: predicated region fallthrough
CT: control target
= control target key end

     0   :  { %vm337_vm0 = vcmask 523264   ;;  %vm519_vm1 = vcmask 261120   ;;  %vm885_vm2 = vcmask 1043456   ;;  %vm693_vm3 = vcmask 130048   ;;  %s1562_s1 = inlined_call_operand.vmem [shape: bf16[128,64], index: 1, kind: input, shape index: {}]   ;;  %s1563_s0 = inlined_call_operand.vmem [shape: bf16[128,128], index: 0, kind: input, shape index: {}]   ;;  %s1564_s2 = inlined_call_operand.vmem [shape: bf16[64,32], index: 2, kind: input, shape index: {}]   ;;  %s1565_s3 = inlined_call_operand.vmem [shape: bf16[32,16], index: 3, kind: input, shape index: {}]   ;;  %s1566_s6 = inlined_call_operand.vmem [shape: f32[8,128], index: 6, kind: input, shape index: {}]   ;;  %s1567_s4 = inlined_call_operand.vmem [shape: bf16[16,8], index: 4, kind: input, shape index: {}]   ;;  %s1568_s5 = inlined_call_operand.vmem [shape: bf16[8,4], index: 5, kind: input, shape index: {}]   ;;  %s1569_s7 = inlined_call_operand.vmem [shape: f32[128,4], index: 7, kind: output, shape index: {}]  }
   0x1   :  { %v1244_v0 = vld [vmem:[%s1562_s1 + $0x38] sm:$0xff]   ;;  %v1245_v1 = vld [vmem:[%s1562_s1 + $0x30] sm:$0xff]   ;;  %v1246_v2 = vld [vmem:[%s1562_s1 + $0x28] sm:$0xff]   ;;  %vm860_vm4 = vcmask 64512   ;;  %vm986_vm5 = vcmask 31744  }
   0x2   :  { %1123 = vmatprep.subr.bf16.mxu0 %v1244_v0  ;;  %v1247_v3 = vld [vmem:[%s1562_s1 + $0x20] sm:$0xff]   ;;  %v1248_v5 = vld [vmem:[%s1562_s1 + $0x18] sm:$0xff]   ;;  %v1249_v6 = vld [vmem:[%s1562_s1 + $0x10] sm:$0xff]  }
   0x3   :  { %1124 = vmatpush3.bf16.msra.mxu0 %v1244_v0  ;;  %v1252_v4 = vld [vmem:[%s1563_s0] sm:$0xff]   ;;  %v1260_v7 = vld [vmem:[%s1564_s2 + $0x18] sm:$0xff]   ;;  %v1261_v8 = vld [vmem:[%s1564_s2 + $0x10] sm:$0xff]  }
   0x4   :  { %1125 = vmatprep.subr.bf16.mxu0 %v1245_v1  ;;  %1139 = vmatprep.mubr.bf16.mxu0 %v1252_v4  ;;  %v1250_v9 = vld [vmem:[%s1562_s1 + $0x8] sm:$0xff]   ;;  %v1251_v11 = vld [vmem:[%s1562_s1] sm:$0xff]   ;;  %v1254_v13 = vld [vmem:[%s1563_s0 + $0x10] sm:$0xff]  }
   0x5   :  { %1235 = vmatprep.subr.bf16.mxu1 %v1260_v7  ;;  %v1262_v10 = vld [vmem:[%s1564_s2 + $0x8] sm:$0xff]   ;;  %v1255_v14 = vld [vmem:[%s1563_s0 + $0x18] sm:$0xff]   ;;  %v1256_v15 = vld [vmem:[%s1563_s0 + $0x20] sm:$0xff]  }
   0x6   :  { %1239 = vmatpush3.bf16.msra.mxu1 %v1260_v7  ;;  %v1253_v12 = vld [vmem:[%s1563_s0 + $0x8] sm:$0xff]   ;;  %v1258_v17 = vld [vmem:[%s1563_s0 + $0x30] sm:$0xff]   ;;  %v1259_v18 = vld [vmem:[%s1563_s0 + $0x38] sm:$0xff]  }
   0x7   :  { %1126 = vmatpush3.bf16.msra.mxu0 %v1245_v1  ;;  %1236 = vmatprep.subr.bf16.mxu1 %v1261_v8  ;;  %v1257_v16 = vld [vmem:[%s1563_s0 + $0x28] sm:$0xff]   ;;  %v1263_v19 = vld [vmem:[%s1564_s2] sm:$0xff]  }
   0x8   :  { %1127 = vmatprep.subr.bf16.mxu0 %v1246_v2  ;;  %v1264_v20 = vld [vmem:[%s1565_s3 + $0x8] sm:$0xff]   ;;  %v1373_v22 = vld [vmem:[%s1566_s6] ss:$0 sm:$0xff] }
   0xa   :  { %1240 = vmatpush3.bf16.msra.mxu1 %v1261_v8 }
   0xb   :  { %1128 = vmatpush3.bf16.msra.mxu0 %v1246_v2  ;;  %1237 = vmatprep.subr.bf16.mxu1 %v1262_v10 }
   0xc   :  { %1129 = vmatprep.subr.bf16.mxu0 %v1247_v3 }
   0xe   :  { %1241 = vmatpush3.bf16.msra.mxu1 %v1262_v10 }
   0xf   :  { %1130 = vmatpush3.bf16.msra.mxu0 %v1247_v3  ;;  %1238 = vmatprep.subr.bf16.mxu1 %v1263_v19 }
  0x10   :  { %1131 = vmatprep.subr.bf16.mxu0 %v1248_v5 }
  0x12   :  { %1242 = vmatpush3.bf16.msra.mxu1 %v1263_v19 }
  0x13   :  { %1132 = vmatpush3.bf16.msra.mxu0 %v1248_v5  ;;  %1179 = vmatprep.subr.bf16.mxu1 %v1264_v20 }
  0x14   :  { %1133 = vmatprep.subr.bf16.mxu0 %v1249_v6 }
  0x17   :  { %1134 = vmatpush3.bf16.msra.mxu0 %v1249_v6 }
  0x18   :  { %1135 = vmatprep.subr.bf16.mxu0 %v1250_v9 }
  0x1b   :  { %1136 = vmatpush3.bf16.msra.mxu0 %v1250_v9 }
  0x1c   :  { %1137 = vmatprep.subr.bf16.mxu0 %v1251_v11 }
  0x1f   :  { %1138 = vmatpush3.bf16.msra.mxu0 %v1251_v11 }
  0x20   :  { %1155 = vmatprep.subr.bf16.mxu0 %v1260_v7 }
  0x22   :  { %1140 = vmatmul.mubr.bf16.vlgmr.msra.gmra.mxu0 %v1253_v12 }
  0x23   :  { %1143 = vmatprep.mubr.bf16.mxu0 %v1254_v13  ;;  %1156 = vmatpush3.bf16.msra.mxu0 %v1260_v7 }
  0x24   :  { %1157 = vmatprep.subr.bf16.mxu0 %v1261_v8 }
  0x27   :  { %1158 = vmatpush3.bf16.msra.mxu0 %v1261_v8 }
  0x28   :  { %1159 = vmatprep.subr.bf16.mxu0 %v1262_v10 }
  0x2a   :  { %1144 = vmatmul.mubr.bf16.gmra.mxu0 %v1255_v14 }
  0x2b   :  { %1147 = vmatprep.mubr.bf16.mxu0 %v1256_v15  ;;  %1160 = vmatpush3.bf16.msra.mxu0 %v1262_v10 }
  0x2c   :  { %1161 = vmatprep.subr.bf16.mxu0 %v1263_v19 }
  0x2f   :  { %1162 = vmatpush3.bf16.msra.mxu0 %v1263_v19 }
  0x32   :  { %1148 = vmatmul.mubr.bf16.gmra.mxu0 %v1257_v16 }
  0x33   :  { %1151 = vmatprep.mubr.bf16.mxu0 %v1258_v17 }
  0x3a   :  { %1152 = vmatmul.mubr.bf16.gmra.mxu0 %v1259_v18 }
  0xe2   :  { %v1141_v21 = vpop.f32.mrf.mxu0 }
  0xe3   :  { %v207_v25 = vadd.f32 %v1141_v21, %v1373_v22 }
  0xe4   :  { %v198_v23 = vpop.f32.mrf.mxu0 }
  0xe5   :  { %v199_v24 = vadd.f32 %v1373_v22, %v198_v23  ;;  %v263_v32 = vmul.f32 0.01, %v207_v25 }
  0xe6   :  { %v1142_v26 = vpop.f32.mrf.mxu0 }
  0xe7   :  { %v210_v27 = vadd.f32 %v1142_v26, %v1373_v22  ;;  %v261_v29 = vmul.f32 0.01, %v199_v24  ;;  %v279_v40 = vmax.f32 %v207_v25, %v263_v32  ;;  %v1405_v32 = vld [vmem:[%s1566_s6 + $0x1] ss:$0 sm:$0xff] }
  0xe8   :  { %v201_v28 = vpop.f32.mrf.mxu0 }
  0xe9   :  { %v264_v30 = vmul.f32 0.01, %v210_v27  ;;  %v202_v31 = vadd.f32 %v1373_v22, %v201_v28  ;;  %v277_v37 = vmax.f32 %v199_v24, %v261_v29 }
  0xea   :  { %v1145_v33 = vpop.f32.mrf.mxu0 }
  0xeb   :  { %v262_v34 = vmul.f32 0.01, %v202_v31  ;;  %v280_v35 = vmax.f32 %v210_v27, %v264_v30  ;;  %v223_v41 = vadd.f32 %v1145_v33, %v1373_v22 }
  0xec   :  { %v214_v36 = vpop.f32.mrf.mxu0 }
  0xed   :  { %v278_v38 = vmax.f32 %v202_v31, %v262_v34  ;;  %v215_v39 = vadd.f32 %v1373_v22, %v214_v36  ;;  %v294_v45 = vpack.c.bf16 %v280_v35, %v279_v40  ;;  %v267_v50 = vmul.f32 0.01, %v223_v41 }
  0xee   :  { %v1146_v42 = vpop.f32.mrf.mxu0 }
  0xef   :  { %v293_v43 = vpack.c.bf16 %v278_v38, %v277_v37  ;;  %v226_v44 = vadd.f32 %v1146_v42, %v1373_v22  ;;  %v265_v47 = vmul.f32 0.01, %v215_v39  ;;  %v283_v58 = vmax.f32 %v223_v41, %v267_v50 }
  0xf0   :  { %v217_v46 = vpop.f32.mrf.mxu0 }
  0xf1   :  { %v268_v48 = vmul.f32 0.01, %v226_v44  ;;  %v218_v49 = vadd.f32 %v1373_v22, %v217_v46  ;;  %1163 = vmatprep.mubr.msk.bf16.mxu0 %vm337_vm0, %v293_v43  ;;  %v281_v55 = vmax.f32 %v215_v39, %v265_v47 }
  0xf2   :  { %v1149_v51 = vpop.f32.mrf.mxu0  ;;  %1164 = vmatmul.mubr.msk.bf16.vlgmr.msra.gmra.mxu0 %vm337_vm0, %v294_v45 }
  0xf3   :  { %v266_v52 = vmul.f32 0.01, %v218_v49  ;;  %v284_v53 = vmax.f32 %v226_v44, %v268_v48  ;;  %v239_v59 = vadd.f32 %v1149_v51, %v1373_v22 }
  0xf4   :  { %v230_v54 = vpop.f32.mrf.mxu0 }
  0xf5   :  { %v282_v56 = vmax.f32 %v218_v49, %v266_v52  ;;  %v231_v57 = vadd.f32 %v1373_v22, %v230_v54  ;;  %v296_v63 = vpack.c.bf16 %v284_v53, %v283_v58  ;;  %v271_v4 = vmul.f32 0.01, %v239_v59 }
  0xf6   :  { %v1150_v60 = vpop.f32.mrf.mxu0 }
  0xf7   :  { %v242_v61 = vadd.f32 %v1150_v60, %v1373_v22  ;;  %v295_v62 = vpack.c.bf16 %v282_v56, %v281_v55  ;;  %v269_v1 = vmul.f32 0.01, %v231_v57  ;;  %v287_v12 = vmax.f32 %v239_v59, %v271_v4 }
  0xf8   :  { %v233_v0 = vpop.f32.mrf.mxu0 }
  0xf9   :  { %v272_v2 = vmul.f32 0.01, %v242_v61  ;;  %v234_v3 = vadd.f32 %v1373_v22, %v233_v0  ;;  %1167 = vmatprep.mubr.msk.bf16.mxu1 %vm337_vm0, %v295_v62  ;;  %v285_v9 = vmax.f32 %v231_v57, %v269_v1 }
  0xfa   :  { %v1153_v5 = vpop.f32.mrf.mxu0  ;;  %1168 = vmatmul.mubr.msk.bf16.vlgmr.msra.gmra.mxu1 %vm337_vm0, %v296_v63 }
  0xfb   :  { %v270_v6 = vmul.f32 0.01, %v234_v3  ;;  %1180 = vmatpush3.bf16.msra.mxu1 %v1264_v20  ;;  %v288_v7 = vmax.f32 %v242_v61, %v272_v2  ;;  %v255_v13 = vadd.f32 %v1153_v5, %v1373_v22 }
  0xfc   :  { %v246_v8 = vpop.f32.mrf.mxu0 }
  0xfd   :  { %v286_v10 = vmax.f32 %v234_v3, %v270_v6  ;;  %v247_v11 = vadd.f32 %v1373_v22, %v246_v8  ;;  %v298_v17 = vpack.c.bf16 %v288_v7, %v287_v12  ;;  %v275_v20 = vmul.f32 0.01, %v255_v13 }
  0xfe   :  { %v1154_v14 = vpop.f32.mrf.mxu0 }
  0xff   :  { %v297_v15 = vpack.c.bf16 %v286_v10, %v285_v9  ;;  %v258_v16 = vadd.f32 %v1154_v14, %v1373_v22  ;;  %v273_v19 = vmul.f32 0.01, %v247_v11  ;;  %v291_v28 = vmax.f32 %v255_v13, %v275_v20 }
 0x100   :  { %v249_v18 = vpop.f32.mrf.mxu0 }
 0x101   :  { %v276_v21 = vmul.f32 0.01, %v258_v16  ;;  %v250_v23 = vadd.f32 %v1373_v22, %v249_v18  ;;  %1171 = vmatprep.mubr.msk.bf16.mxu1 %vm337_vm0, %v297_v15  ;;  %v289_v26 = vmax.f32 %v247_v11, %v273_v19  ;;  %v1265_v22 = vld [vmem:[%s1565_s3] sm:$0xff]  }
 0x102   :  { %1172 = vmatmul.mubr.msk.bf16.gmra.mxu1 %vm337_vm0, %v298_v17  ;;  %1181 = vmatprep.subr.bf16.mxu1 %v1265_v22 }
 0x103   :  { %v274_v24 = vmul.f32 0.01, %v250_v23  ;;  %v292_v25 = vmax.f32 %v258_v16, %v276_v21  ;;  %1182 = vmatpush3.bf16.msra.mxu1 %v1265_v22 }
 0x105   :  { %v290_v27 = vmax.f32 %v250_v23, %v274_v24  ;;  %v300_v30 = vpack.c.bf16 %v292_v25, %v291_v28 }
 0x107   :  { %v299_v29 = vpack.c.bf16 %v290_v27, %v289_v26 }
 0x109   :  { %1175 = vmatprep.mubr.msk.bf16.mxu1 %vm337_vm0, %v299_v29 }
 0x10a   :  { %1176 = vmatmul.mubr.msk.bf16.gmra.mxu1 %vm337_vm0, %v300_v30 }
 0x1b2   :  { %v1165_v31 = vpop.f32.mrf.mxu0 }
 0x1b3   :  { %v405_v35 = vadd.f32 %v1165_v31, %v1405_v32 }
 0x1b4   :  { %v396_v33 = vpop.f32.mrf.mxu0 }
 0x1b5   :  { %v397_v34 = vadd.f32 %v1405_v32, %v396_v33  ;;  %v461_v42 = vmul.f32 0.01, %v405_v35 }
 0x1b6   :  { %v1166_v36 = vpop.f32.mrf.mxu0 }
 0x1b7   :  { %v408_v37 = vadd.f32 %v1166_v36, %v1405_v32  ;;  %v459_v39 = vmul.f32 0.01, %v397_v34  ;;  %v477_v50 = vmax.f32 %v405_v35, %v461_v42 }
 0x1b8   :  { %v399_v38 = vpop.f32.mrf.mxu0 }
 0x1b9   :  { %v462_v40 = vmul.f32 0.01, %v408_v37  ;;  %v400_v41 = vadd.f32 %v1405_v32, %v399_v38  ;;  %v475_v47 = vmax.f32 %v397_v34, %v459_v39 }
 0x1ba   :  { %v1169_v43 = vpop.f32.mrf.mxu1 }
 0x1bb   :  { %v460_v44 = vmul.f32 0.01, %v400_v41  ;;  %v478_v45 = vmax.f32 %v408_v37, %v462_v40  ;;  %v421_v51 = vadd.f32 %v1169_v43, %v1405_v32 }
 0x1bc   :  { %v412_v46 = vpop.f32.mrf.mxu1 }
 0x1bd   :  { %v476_v48 = vmax.f32 %v400_v41, %v460_v44  ;;  %v413_v49 = vadd.f32 %v1405_v32, %v412_v46  ;;  %v492_v55 = vpack.c.bf16 %v478_v45, %v477_v50  ;;  %v465_v60 = vmul.f32 0.01, %v421_v51  ;;  %v855_v41 = vld [vmem:[%s1568_s5] sm:$0xf] }
 0x1be   :  { %v1170_v52 = vpop.f32.mrf.mxu1  ;;  %1243 = vmatprep.subr.msk.bf16.mxu1 %vm885_vm2, %v855_v41  ;;  %v887_v42 = vsel %vm885_vm2, %v855_v41, 0  ;;  %v1440_v44 = vld [vmem:[%s1566_s6 + $0x2] ss:$0 sm:$0xff] }
 0x1bf   :  { %v491_v53 = vpack.c.bf16 %v476_v48, %v475_v47  ;;  %v424_v54 = vadd.f32 %v1170_v52, %v1405_v32  ;;  %v463_v57 = vmul.f32 0.01, %v413_v49  ;;  %v481_v4 = vmax.f32 %v421_v51, %v465_v60 }
 0x1c0   :  { %v415_v56 = vpop.f32.mrf.mxu1 }
 0x1c1   :  { %v466_v58 = vmul.f32 0.01, %v424_v54  ;;  %v416_v59 = vadd.f32 %v1405_v32, %v415_v56  ;;  %1183 = vmatprep.mubr.msk.bf16.mxu1 %vm519_vm1, %v491_v53  ;;  %v479_v1 = vmax.f32 %v413_v49, %v463_v57 }
 0x1c2   :  { %v1173_v61 = vpop.f32.mrf.mxu1  ;;  %1184 = vmatmul.mubr.msk.bf16.vlgmr.msra.gmra.mxu1 %vm519_vm1, %v492_v55 }
 0x1c3   :  { %v464_v62 = vmul.f32 0.01, %v416_v59  ;;  %v482_v63 = vmax.f32 %v424_v54, %v466_v58  ;;  %v437_v5 = vadd.f32 %v1173_v61, %v1405_v32  ;;  %1218 = vmatpush3.bf16.msra.mxu1 %v887_v42 }
 0x1c4   :  { %v428_v0 = vpop.f32.mrf.mxu1 }
 0x1c5   :  { %v480_v2 = vmax.f32 %v416_v59, %v464_v62  ;;  %v429_v3 = vadd.f32 %v1405_v32, %v428_v0  ;;  %v494_v9 = vpack.c.bf16 %v482_v63, %v481_v4  ;;  %v469_v14 = vmul.f32 0.01, %v437_v5 }
 0x1c6   :  { %v1174_v6 = vpop.f32.mrf.mxu1 }
 0x1c7   :  { %v493_v7 = vpack.c.bf16 %v480_v2, %v479_v1  ;;  %v440_v8 = vadd.f32 %v1174_v6, %v1405_v32  ;;  %v467_v11 = vmul.f32 0.01, %v429_v3  ;;  %v485_v20 = vmax.f32 %v437_v5, %v469_v14 }
 0x1c8   :  { %v431_v10 = vpop.f32.mrf.mxu1 }
 0x1c9   :  { %v470_v12 = vmul.f32 0.01, %v440_v8  ;;  %v432_v13 = vadd.f32 %v1405_v32, %v431_v10  ;;  %1187 = vmatprep.mubr.msk.bf16.mxu1 %vm519_vm1, %v493_v7  ;;  %v483_v19 = vmax.f32 %v429_v3, %v467_v11 }
 0x1ca   :  { %v1177_v15 = vpop.f32.mrf.mxu1  ;;  %1188 = vmatmul.mubr.msk.bf16.gmra.mxu1 %vm519_vm1, %v494_v9 }
 0x1cb   :  { %v468_v16 = vmul.f32 0.01, %v432_v13  ;;  %v486_v17 = vmax.f32 %v440_v8, %v470_v12  ;;  %v453_v24 = vadd.f32 %v1177_v15, %v1405_v32 }
 0x1cc   :  { %v444_v18 = vpop.f32.mrf.mxu1 }
 0x1cd   :  { %v484_v21 = vmax.f32 %v432_v13, %v468_v16  ;;  %v445_v23 = vadd.f32 %v1405_v32, %v444_v18  ;;  %v496_v28 = vpack.c.bf16 %v486_v17, %v485_v20  ;;  %v473_v33 = vmul.f32 0.01, %v453_v24 }
 0x1ce   :  { %v1178_v25 = vpop.f32.mrf.mxu1 }
 0x1cf   :  { %v495_v26 = vpack.c.bf16 %v484_v21, %v483_v19  ;;  %v456_v27 = vadd.f32 %v1178_v25, %v1405_v32  ;;  %v471_v30 = vmul.f32 0.01, %v445_v23  ;;  %v489_v38 = vmax.f32 %v453_v24, %v473_v33 }
 0x1d0   :  { %v447_v29 = vpop.f32.mrf.mxu1 }
 0x1d1   :  { %v474_v22 = vmul.f32 0.01, %v456_v27  ;;  %v448_v31 = vadd.f32 %v1405_v32, %v447_v29  ;;  %1191 = vmatprep.mubr.msk.bf16.mxu1 %vm519_vm1, %v495_v26  ;;  %v487_v36 = vmax.f32 %v445_v23, %v471_v30  ;;  %v1266_v32 = vld [vmem:[%s1567_s4] sm:$0xff]  }
 0x1d2   :  { %1192 = vmatmul.mubr.msk.bf16.gmra.mxu1 %vm519_vm1, %v496_v28  ;;  %1199 = vmatprep.subr.bf16.mxu0 %v1266_v32 }
 0x1d3   :  { %v472_v34 = vmul.f32 0.01, %v448_v31  ;;  %v490_v35 = vmax.f32 %v456_v27, %v474_v22  ;;  %1200 = vmatpush3.bf16.msra.mxu0 %v1266_v32 }
 0x1d5   :  { %v488_v37 = vmax.f32 %v448_v31, %v472_v34  ;;  %v498_v40 = vpack.c.bf16 %v490_v35, %v489_v38 }
 0x1d7   :  { %v497_v39 = vpack.c.bf16 %v488_v37, %v487_v36 }
 0x1d9   :  { %1195 = vmatprep.mubr.msk.bf16.mxu1 %vm519_vm1, %v497_v39 }
 0x1da   :  { %1196 = vmatmul.mubr.msk.bf16.gmra.mxu1 %vm519_vm1, %v498_v40 }
 0x282   :  { %v1185_v43 = vpop.f32.mrf.mxu1 }
 0x283   :  { %v587_v47 = vadd.f32 %v1185_v43, %v1440_v44 }
 0x284   :  { %v578_v45 = vpop.f32.mrf.mxu1 }
 0x285   :  { %v579_v46 = vadd.f32 %v1440_v44, %v578_v45  ;;  %v643_v54 = vmul.f32 0.01, %v587_v47 }
 0x286   :  { %v1186_v48 = vpop.f32.mrf.mxu1 }
 0x287   :  { %v590_v49 = vadd.f32 %v1186_v48, %v1440_v44  ;;  %v641_v51 = vmul.f32 0.01, %v579_v46  ;;  %v659_v62 = vmax.f32 %v587_v47, %v643_v54 }
 0x288   :  { %v581_v50 = vpop.f32.mrf.mxu1 }
 0x289   :  { %v644_v52 = vmul.f32 0.01, %v590_v49  ;;  %v582_v53 = vadd.f32 %v1440_v44, %v581_v50  ;;  %v657_v59 = vmax.f32 %v579_v46, %v641_v51 }
 0x28a   :  { %v1189_v55 = vpop.f32.mrf.mxu1 }
 0x28b   :  { %v642_v56 = vmul.f32 0.01, %v582_v53  ;;  %v660_v57 = vmax.f32 %v590_v49, %v644_v52  ;;  %v603_v63 = vadd.f32 %v1189_v55, %v1440_v44 }
 0x28c   :  { %v594_v58 = vpop.f32.mrf.mxu1 }
 0x28d   :  { %v658_v60 = vmax.f32 %v582_v53, %v642_v56  ;;  %v595_v61 = vadd.f32 %v1440_v44, %v594_v58  ;;  %v674_v3 = vpack.c.bf16 %v660_v57, %v659_v62  ;;  %v647_v8 = vmul.f32 0.01, %v603_v63 }
 0x28e   :  { %v1190_v0 = vpop.f32.mrf.mxu1 }
 0x28f   :  { %v673_v1 = vpack.c.bf16 %v658_v60, %v657_v59  ;;  %v606_v2 = vadd.f32 %v1190_v0, %v1440_v44  ;;  %v645_v5 = vmul.f32 0.01, %v595_v61  ;;  %v663_v16 = vmax.f32 %v603_v63, %v647_v8 }
 0x290   :  { %v597_v4 = vpop.f32.mrf.mxu1 }
 0x291   :  { %v648_v6 = vmul.f32 0.01, %v606_v2  ;;  %v598_v7 = vadd.f32 %v1440_v44, %v597_v4  ;;  %1201 = vmatprep.mubr.msk.bf16.mxu0 %vm693_vm3, %v673_v1  ;;  %v661_v13 = vmax.f32 %v595_v61, %v645_v5 }
 0x292   :  { %v1193_v9 = vpop.f32.mrf.mxu1  ;;  %1202 = vmatmul.mubr.msk.bf16.vlgmr.msra.gmra.mxu0 %vm693_vm3, %v674_v3 }
 0x293   :  { %v646_v10 = vmul.f32 0.01, %v598_v7  ;;  %v664_v11 = vmax.f32 %v606_v2, %v648_v6  ;;  %v619_v17 = vadd.f32 %v1193_v9, %v1440_v44 }
 0x294   :  { %v610_v12 = vpop.f32.mrf.mxu1 }
 0x295   :  { %v662_v14 = vmax.f32 %v598_v7, %v646_v10  ;;  %v611_v15 = vadd.f32 %v1440_v44, %v610_v12  ;;  %v676_v23 = vpack.c.bf16 %v664_v11, %v663_v16  ;;  %v651_v27 = vmul.f32 0.01, %v619_v17 }
 0x296   :  { %v1194_v18 = vpop.f32.mrf.mxu1 }
 0x297   :  { %v675_v19 = vpack.c.bf16 %v662_v14, %v661_v13  ;;  %v622_v21 = vadd.f32 %v1194_v18, %v1440_v44  ;;  %v649_v24 = vmul.f32 0.01, %v611_v15  ;;  %v667_v35 = vmax.f32 %v619_v17, %v651_v27 }
 0x298   :  { %v613_v20 = vpop.f32.mrf.mxu1 }
 0x299   :  { %v652_v25 = vmul.f32 0.01, %v622_v21  ;;  %v614_v26 = vadd.f32 %v1440_v44, %v613_v20  ;;  %1205 = vmatprep.mubr.msk.bf16.mxu0 %vm693_vm3, %v675_v19  ;;  %v665_v31 = vmax.f32 %v611_v15, %v649_v24 }
 0x29a   :  { %v1197_v28 = vpop.f32.mrf.mxu1  ;;  %1206 = vmatmul.mubr.msk.bf16.gmra.mxu0 %vm693_vm3, %v676_v23 }
 0x29b   :  { %v650_v29 = vmul.f32 0.01, %v614_v26  ;;  %v668_v30 = vmax.f32 %v622_v21, %v652_v25  ;;  %v635_v36 = vadd.f32 %v1197_v28, %v1440_v44 }
 0x29c   :  { %v626_v22 = vpop.f32.mrf.mxu1 }
 0x29d   :  { %v666_v33 = vmax.f32 %v614_v26, %v650_v29  ;;  %v627_v34 = vadd.f32 %v1440_v44, %v626_v22  ;;  %v678_v40 = vpack.c.bf16 %v668_v30, %v667_v35  ;;  %v655_v45 = vmul.f32 0.01, %v635_v36 }
 0x29e   :  { %v1198_v37 = vpop.f32.mrf.mxu1 }
 0x29f   :  { %v677_v38 = vpack.c.bf16 %v666_v33, %v665_v31  ;;  %v638_v39 = vadd.f32 %v1198_v37, %v1440_v44  ;;  %v653_v41 = vmul.f32 0.01, %v627_v34  ;;  %v671_v50 = vmax.f32 %v635_v36, %v655_v45 }
 0x2a0   :  { %v629_v32 = vpop.f32.mrf.mxu1 }
 0x2a1   :  { %v656_v42 = vmul.f32 0.01, %v638_v39  ;;  %v630_v43 = vadd.f32 %v1440_v44, %v629_v32  ;;  %1209 = vmatprep.mubr.msk.bf16.mxu0 %vm693_vm3, %v677_v38  ;;  %v669_v48 = vmax.f32 %v627_v34, %v653_v41  ;;  %v1469_v44 = vld [vmem:[%s1566_s6 + $0x3] ss:$0 sm:$0xff] }
 0x2a2   :  { %1210 = vmatmul.mubr.msk.bf16.gmra.mxu0 %vm693_vm3, %v678_v40 }
 0x2a3   :  { %v654_v46 = vmul.f32 0.01, %v630_v43  ;;  %v672_v47 = vmax.f32 %v638_v39, %v656_v42 }
 0x2a5   :  { %v670_v49 = vmax.f32 %v630_v43, %v654_v46  ;;  %v680_v52 = vpack.c.bf16 %v672_v47, %v671_v50 }
 0x2a7   :  { %v679_v51 = vpack.c.bf16 %v670_v49, %v669_v48 }
 0x2a9   :  { %1213 = vmatprep.mubr.msk.bf16.mxu0 %vm693_vm3, %v679_v51 }
 0x2aa   :  { %1214 = vmatmul.mubr.msk.bf16.gmra.mxu0 %vm693_vm3, %v680_v52 }
 0x352   :  { %v1203_v53 = vpop.f32.mrf.mxu0 }
 0x353   :  { %v761_v56 = vadd.f32 %v1203_v53, %v1469_v44 }
 0x354   :  { %v752_v54 = vpop.f32.mrf.mxu0 }
 0x355   :  { %v753_v55 = vadd.f32 %v1469_v44, %v752_v54  ;;  %v817_v63 = vmul.f32 0.01, %v761_v56 }
 0x356   :  { %v1204_v57 = vpop.f32.mrf.mxu0 }
 0x357   :  { %v764_v58 = vadd.f32 %v1204_v57, %v1469_v44  ;;  %v815_v60 = vmul.f32 0.01, %v753_v55  ;;  %v833_v7 = vmax.f32 %v761_v56, %v817_v63 }
 0x358   :  { %v755_v59 = vpop.f32.mrf.mxu0 }
 0x359   :  { %v818_v61 = vmul.f32 0.01, %v764_v58  ;;  %v756_v62 = vadd.f32 %v1469_v44, %v755_v59  ;;  %v831_v4 = vmax.f32 %v753_v55, %v815_v60 }
 0x35a   :  { %v1207_v0 = vpop.f32.mrf.mxu0 }
 0x35b   :  { %v816_v1 = vmul.f32 0.01, %v756_v62  ;;  %v834_v2 = vmax.f32 %v764_v58, %v818_v61  ;;  %v777_v8 = vadd.f32 %v1207_v0, %v1469_v44 }
 0x35c   :  { %v768_v3 = vpop.f32.mrf.mxu0 }
 0x35d   :  { %v832_v5 = vmax.f32 %v756_v62, %v816_v1  ;;  %v769_v6 = vadd.f32 %v1469_v44, %v768_v3  ;;  %v848_v12 = vpack.c.bf16 %v834_v2, %v833_v7  ;;  %v821_v17 = vmul.f32 0.01, %v777_v8 }
 0x35e   :  { %v1208_v9 = vpop.f32.mrf.mxu0 }
 0x35f   :  { %v847_v10 = vpack.c.bf16 %v832_v5, %v831_v4  ;;  %v780_v11 = vadd.f32 %v1208_v9, %v1469_v44  ;;  %v819_v14 = vmul.f32 0.01, %v769_v6  ;;  %v837_v26 = vmax.f32 %v777_v8, %v821_v17 }
 0x360   :  { %v771_v13 = vpop.f32.mrf.mxu0 }
 0x361   :  { %v822_v15 = vmul.f32 0.01, %v780_v11  ;;  %v772_v16 = vadd.f32 %v1469_v44, %v771_v13  ;;  %1219 = vmatprep.mubr.msk.bf16.mxu1 %vm860_vm4, %v847_v10  ;;  %v835_v20 = vmax.f32 %v769_v6, %v819_v14 }
 0x362   :  { %v1211_v18 = vpop.f32.mrf.mxu0  ;;  %1220 = vmatmul.mubr.msk.bf16.vlgmr.msra.gmra.mxu1 %vm860_vm4, %v848_v12 }
 0x363   :  { %v820_v19 = vmul.f32 0.01, %v772_v16  ;;  %v838_v21 = vmax.f32 %v780_v11, %v822_v15  ;;  %v793_v27 = vadd.f32 %v1211_v18, %v1469_v44 }
 0x364   :  { %v784_v23 = vpop.f32.mrf.mxu0 }
 0x365   :  { %v836_v24 = vmax.f32 %v772_v16, %v820_v19  ;;  %v785_v25 = vadd.f32 %v1469_v44, %v784_v23  ;;  %v850_v22 = vpack.c.bf16 %v838_v21, %v837_v26  ;;  %v825_v36 = vmul.f32 0.01, %v793_v27 }
 0x366   :  { %v1212_v28 = vpop.f32.mrf.mxu0 }
 0x367   :  { %v849_v29 = vpack.c.bf16 %v836_v24, %v835_v20  ;;  %v796_v30 = vadd.f32 %v1212_v28, %v1469_v44  ;;  %v823_v33 = vmul.f32 0.01, %v785_v25  ;;  %v841_v43 = vmax.f32 %v793_v27, %v825_v36 }
 0x368   :  { %v787_v31 = vpop.f32.mrf.mxu0 }
 0x369   :  { %v826_v34 = vmul.f32 0.01, %v796_v30  ;;  %v788_v35 = vadd.f32 %v1469_v44, %v787_v31  ;;  %1223 = vmatprep.mubr.msk.bf16.mxu1 %vm860_vm4, %v849_v29  ;;  %v839_v32 = vmax.f32 %v785_v25, %v823_v33 }
 0x36a   :  { %v1215_v37 = vpop.f32.mrf.mxu0  ;;  %1224 = vmatmul.mubr.msk.bf16.gmra.mxu1 %vm860_vm4, %v850_v22 }
 0x36b   :  { %v824_v38 = vmul.f32 0.01, %v788_v35  ;;  %v842_v39 = vmax.f32 %v796_v30, %v826_v34  ;;  %v809_v45 = vadd.f32 %v1215_v37, %v1469_v44 }
 0x36c   :  { %v800_v40 = vpop.f32.mrf.mxu0 }
 0x36d   :  { %v840_v41 = vmax.f32 %v788_v35, %v824_v38  ;;  %v801_v42 = vadd.f32 %v1469_v44, %v800_v40  ;;  %v852_v49 = vpack.c.bf16 %v842_v39, %v841_v43  ;;  %v829_v54 = vmul.f32 0.01, %v809_v45 }
 0x36e   :  { %v1216_v46 = vpop.f32.mrf.mxu0 }
 0x36f   :  { %v851_v47 = vpack.c.bf16 %v840_v41, %v839_v32  ;;  %v812_v48 = vadd.f32 %v1216_v46, %v1469_v44  ;;  %v827_v51 = vmul.f32 0.01, %v801_v42  ;;  %v845_v59 = vmax.f32 %v809_v45, %v829_v54 }
 0x370   :  { %v803_v50 = vpop.f32.mrf.mxu0 }
 0x371   :  { %v830_v52 = vmul.f32 0.01, %v812_v48  ;;  %v804_v53 = vadd.f32 %v1469_v44, %v803_v50  ;;  %1227 = vmatprep.mubr.msk.bf16.mxu1 %vm860_vm4, %v851_v47  ;;  %v843_v57 = vmax.f32 %v801_v42, %v827_v51  ;;  %v1058_v44 = vld [vmem:[%s1566_s6 + $0x4] ss:$0 sm:$0xff] }
 0x372   :  { %1228 = vmatmul.mubr.msk.bf16.gmra.mxu1 %vm860_vm4, %v852_v49 }
 0x373   :  { %v828_v55 = vmul.f32 0.01, %v804_v53  ;;  %v846_v56 = vmax.f32 %v812_v48, %v830_v52 }
 0x375   :  { %v844_v58 = vmax.f32 %v804_v53, %v828_v55  ;;  %v854_v61 = vpack.c.bf16 %v846_v56, %v845_v59 }
 0x377   :  { %v853_v60 = vpack.c.bf16 %v844_v58, %v843_v57 }
 0x379   :  { %1231 = vmatprep.mubr.msk.bf16.mxu1 %vm860_vm4, %v853_v60 }
 0x37a   :  { %1232 = vmatmul.mubr.msk.bf16.gmra.mxu1 %vm860_vm4, %v854_v61 }
 0x422   :  { %v1221_v62 = vpop.f32.mrf.mxu1 }
 0x423   :  { %v932_v63 = vadd.f32 %v1221_v62, %v1058_v44 }
 0x424   :  { %v923_v0 = vpop.f32.mrf.mxu1 }
 0x425   :  { %989 = vst.msk [vmem:[%s1569_s7 + $0x10] sm:$0xff] %vm986_vm5, %v932_v63  ;;  %v924_v1 = vadd.f32 %v1058_v44, %v923_v0 }
 0x426   :  { %v1222_v2 = vpop.f32.mrf.mxu1 }
 0x427   :  { %987 = vst.msk [vmem:[%s1569_s7] sm:$0xff] %vm986_vm5, %v924_v1  ;;  %v935_v3 = vadd.f32 %v1222_v2, %v1058_v44 }
 0x428   :  { %v926_v4 = vpop.f32.mrf.mxu1 }
 0x429   :  { %990 = vst.msk [vmem:[%s1569_s7 + $0x18] sm:$0xff] %vm986_vm5, %v935_v3  ;;  %v927_v5 = vadd.f32 %v1058_v44, %v926_v4 }
 0x42a   :  { %v1225_v6 = vpop.f32.mrf.mxu1 }
 0x42b   :  { %988 = vst.msk [vmem:[%s1569_s7 + $0x8] sm:$0xff] %vm986_vm5, %v927_v5  ;;  %v948_v7 = vadd.f32 %v1225_v6, %v1058_v44 }
 0x42c   :  { %v939_v8 = vpop.f32.mrf.mxu1 }
 0x42d   :  { %993 = vst.msk [vmem:[%s1569_s7 + $0x30] sm:$0xff] %vm986_vm5, %v948_v7  ;;  %v940_v9 = vadd.f32 %v1058_v44, %v939_v8 }
 0x42e   :  { %v1226_v10 = vpop.f32.mrf.mxu1 }
 0x42f   :  { %991 = vst.msk [vmem:[%s1569_s7 + $0x20] sm:$0xff] %vm986_vm5, %v940_v9  ;;  %v951_v11 = vadd.f32 %v1226_v10, %v1058_v44 }
 0x430   :  { %v942_v12 = vpop.f32.mrf.mxu1 }
 0x431   :  { %994 = vst.msk [vmem:[%s1569_s7 + $0x38] sm:$0xff] %vm986_vm5, %v951_v11  ;;  %v943_v13 = vadd.f32 %v1058_v44, %v942_v12 }
 0x432   :  { %v1229_v14 = vpop.f32.mrf.mxu1 }
 0x433   :  { %992 = vst.msk [vmem:[%s1569_s7 + $0x28] sm:$0xff] %vm986_vm5, %v943_v13  ;;  %v964_v15 = vadd.f32 %v1229_v14, %v1058_v44 }
 0x434   :  { %v955_v16 = vpop.f32.mrf.mxu1 }
 0x435   :  { %997 = vst.msk [vmem:[%s1569_s7 + $0x50] sm:$0xff] %vm986_vm5, %v964_v15  ;;  %v956_v17 = vadd.f32 %v1058_v44, %v955_v16 }
 0x436   :  { %v1230_v18 = vpop.f32.mrf.mxu1 }
 0x437   :  { %995 = vst.msk [vmem:[%s1569_s7 + $0x40] sm:$0xff] %vm986_vm5, %v956_v17  ;;  %v967_v19 = vadd.f32 %v1230_v18, %v1058_v44 }
 0x438   :  { %v958_v21 = vpop.f32.mrf.mxu1 }
 0x439   :  { %998 = vst.msk [vmem:[%s1569_s7 + $0x58] sm:$0xff] %vm986_vm5, %v967_v19  ;;  %v959_v23 = vadd.f32 %v1058_v44, %v958_v21 }
 0x43a   :  { %v1233_v20 = vpop.f32.mrf.mxu1 }
 0x43b   :  { %996 = vst.msk [vmem:[%s1569_s7 + $0x48] sm:$0xff] %vm986_vm5, %v959_v23  ;;  %v980_v24 = vadd.f32 %v1233_v20, %v1058_v44 }
 0x43c   :  { %v971_v25 = vpop.f32.mrf.mxu1 }
 0x43d   :  { %1001 = vst.msk [vmem:[%s1569_s7 + $0x70] sm:$0xff] %vm986_vm5, %v980_v24  ;;  %v972_v26 = vadd.f32 %v1058_v44, %v971_v25 }
 0x43e   :  { %v1234_v27 = vpop.f32.mrf.mxu1 }
 0x43f   :  { %999 = vst.msk [vmem:[%s1569_s7 + $0x60] sm:$0xff] %vm986_vm5, %v972_v26  ;;  %v983_v28 = vadd.f32 %v1234_v27, %v1058_v44 }
 0x440   :  { %v974_v29 = vpop.f32.mrf.mxu1 }
 0x441   :  { %1002 = vst.msk [vmem:[%s1569_s7 + $0x78] sm:$0xff] %vm986_vm5, %v983_v28  ;;  %v975_v30 = vadd.f32 %v1058_v44, %v974_v29 }
 0x443   :  { %1000 = vst.msk [vmem:[%s1569_s7 + $0x68] sm:$0xff] %vm986_vm5, %v975_v30 }

</bundles_post_ra>
